<compile_context>
chip_gen: v6e
topology: v6e:2x2x1
jax: 0.10.0
libtpu: 0.0.40
codegen_flags: <defaults>
</compile_context>

<pallas_src>
import functools
import math

import jax
import jax.numpy as jnp
from jax.experimental import pallas as pl
from jax.experimental.pallas import tpu as pltpu


# ----------------------------- Linear (tiled matmul + bias) ------------------

def linear_kernel(x_ref, w_ref, b_ref, o_ref, acc_ref):
    @pl.when(pl.program_id(2) == 0)
    def _init():
        acc_ref[...] = jnp.zeros_like(acc_ref)

    acc_ref[...] += jnp.dot(x_ref[...], w_ref[...],
                            preferred_element_type=jnp.float32)

    @pl.when(pl.program_id(2) == pl.num_programs(2) - 1)
    def _finalize():
        o_ref[...] = (acc_ref[...] + b_ref[...].astype(jnp.float32)
                      ).astype(o_ref.dtype)


def linear(x2d, w, b, *, bm=256, bn=256, bk=512):
    """y = x2d @ w + b with a pipelined (M, N, K) grid and f32 accumulation.

    Tile defaults target v6e/v7x (256-aligned); clamped to the array dims for
    small problems.
    # TODO(synk): derive per-chip tiles from pltpu.get_tpu_info() (halve the
    # budget for v7x's 64 MiB VMEM, prefer 128-aligned tiles on v5e).
    """
    M, K = x2d.shape
    N = w.shape[1]
    bm, bn, bk = min(bm, M), min(bn, N), min(bk, K)
    assert M % bm == 0 and N % bn == 0 and K % bk == 0
    grid = (M // bm, N // bn, K // bk)
    return pl.pallas_call(
        linear_kernel,
        out_shape=jax.ShapeDtypeStruct((M, N), x2d.dtype),
        grid_spec=pltpu.PrefetchScalarGridSpec(
            num_scalar_prefetch=0,
            grid=grid,
            in_specs=[
                pl.BlockSpec((bm, bk), lambda i, j, k: (i, k)),
                pl.BlockSpec((bk, bn), lambda i, j, k: (k, j)),
                pl.BlockSpec((1, bn), lambda i, j, k: (0, j)),
            ],
            out_specs=pl.BlockSpec((bm, bn), lambda i, j, k: (i, j)),
            scratch_shapes=[pltpu.VMEM((bm, bn), jnp.float32)],
        ),
        compiler_params=pltpu.CompilerParams(
            dimension_semantics=("parallel", "parallel", "arbitrary")),
    )(x2d, w, b.reshape(1, N))


# ----------------------------- Flash causal attention ------------------------

def flash_attention_kernel(q_ref, k_ref, v_ref, o_ref, m_sc, l_sc, acc_sc,
                           *, n_head, head_dim, scale, q_tile, kv_tile):
    qi = pl.program_id(1)
    ki = pl.program_id(2)

    @pl.when(ki == 0)
    def _init():
        m_sc[...] = jnp.full_like(m_sc, -jnp.inf)
        l_sc[...] = jnp.zeros_like(l_sc)
        acc_sc[...] = jnp.zeros_like(acc_sc)

    # Skip KV tiles that lie entirely above the causal diagonal.
    @pl.when(ki * kv_tile < (qi + 1) * q_tile)
    def _compute():
        # Lane-dense (tile, C) loads; heads split with static lane slices.
        q = q_ref[0] * scale                       # fold 1/sqrt(D) into q
        k = k_ref[0]
        v = v_ref[0]

        # Per-tile causal mask from tile offsets (not a full (T,T) iota).
        q_pos = qi * q_tile + jax.lax.broadcasted_iota(
            jnp.int32, (q_tile, kv_tile), 0)
        k_pos = ki * kv_tile + jax.lax.broadcasted_iota(
            jnp.int32, (q_tile, kv_tile), 1)
        causal = k_pos <= q_pos

        for h in range(n_head):                    # static unroll over heads
            lo, hi = h * head_dim, (h + 1) * head_dim
            qh, kh, vh = q[:, lo:hi], k[:, lo:hi], v[:, lo:hi]

            # q @ k^T on the MXU: operands in input dtype, f32 accumulation.
            s = jax.lax.dot_general(
                qh, kh, (((1,), (1,)), ((), ())),
                preferred_element_type=jnp.float32)        # (tq, tk) f32
            s = jnp.where(causal, s, -jnp.inf)

            m_prev = m_sc[h]                               # (tq, 1)
            m_new = jnp.maximum(m_prev, jnp.max(s, axis=-1, keepdims=True))
            alpha = jnp.exp(m_prev - m_new)
            p = jnp.exp(s - m_new)                         # f32 softmax stats
            l_sc[h] = alpha * l_sc[h] + jnp.sum(p, axis=-1, keepdims=True)
            acc_sc[h] = alpha * acc_sc[h] + jnp.dot(
                p.astype(vh.dtype), vh, preferred_element_type=jnp.float32)
            m_sc[h] = m_new

    @pl.when(ki == pl.num_programs(2) - 1)
    def _finalize():
        # Deferred normalization: one approximate reciprocal (EUP slot) scales
        # the (tq, D) accumulators instead of dividing (tq, tk) probabilities.
        inv_l = pl.reciprocal(l_sc[...], approx=True)      # (H, tq, 1)
        out = jnp.concatenate(
            [acc_sc[h] * inv_l[h] for h in range(n_head)], axis=-1)
        o_ref[0] = out.astype(o_ref.dtype)                 # lane-dense store


def causal_attention(q, k, v, n_head, *, q_tile=128, kv_tile=128):
    """q, k, v, out: (B, T, C) with heads packed along C.

    Flash-style causal attention; heads are split inside the kernel so no
    (B, H, T, D) transposes are needed outside.  Default tiles suit v6e/v7x
    with head_dim=64; raise them on v6e (128 MiB VMEM), halve on v7x (64 MiB).
    Tiles are clamped to T for small problems.
    """
    B, T, C = q.shape
    assert C % n_head == 0
    head_dim = C // n_head
    tq, tk = min(q_tile, T), min(kv_tile, T)
    assert T % tq == 0 and T % tk == 0
    scale = 1.0 / math.sqrt(head_dim)

    kernel = functools.partial(
        flash_attention_kernel, n_head=n_head, head_dim=head_dim, scale=scale,
        q_tile=tq, kv_tile=tk)
    q_spec = pl.BlockSpec((1, tq, C), lambda b, qi, ki: (b, qi, 0))
    kv_spec = pl.BlockSpec((1, tk, C), lambda b, qi, ki: (b, ki, 0))
    return pl.pallas_call(
        kernel,
        out_shape=jax.ShapeDtypeStruct((B, T, C), q.dtype),
        grid_spec=pltpu.PrefetchScalarGridSpec(
            num_scalar_prefetch=0,
            grid=(B, T // tq, T // tk),   # B * q_tiles parallel iterations
            in_specs=[q_spec, kv_spec, kv_spec],
            out_specs=q_spec,
            scratch_shapes=[
                pltpu.VMEM((n_head, tq, 1), jnp.float32),         # running max
                pltpu.VMEM((n_head, tq, 1), jnp.float32),         # running sum
                pltpu.VMEM((n_head, tq, head_dim), jnp.float32),  # accumulator
            ],
        ),
        compiler_params=pltpu.CompilerParams(
            dimension_semantics=("parallel", "parallel", "arbitrary")),
    )(q, k, v)


# ----------------------------- Module forward --------------------------------

def causal_self_attention(x, params, n_head):
    """Forward pass equivalent to the PyTorch CausalSelfAttention module."""
    B, T, C = x.shape
    qkv = linear(x.reshape(B * T, C), params["w_attn"], params["b_attn"])
    qkv = qkv.reshape(B, T, 3 * C)
    # Channel-only split; no head transposes (heads are split in the kernel).
    q, k, v = jnp.split(qkv, 3, axis=-1)
    y = causal_attention(q, k, v, n_head)                   # (B, T, C)
    y = linear(y.reshape(B * T, C), params["w_proj"], params["b_proj"])
    return y.reshape(B, T, C)


# ----------------------------- Reference (pure JAX) ---------------------------

def reference(x, params, n_head):
    B, T, C = x.shape
    hd = C // n_head
    qkv = x.reshape(B * T, C) @ params["w_attn"] + params["b_attn"]
    qkv = qkv.reshape(B, T, 3 * C)
    q, k, v = jnp.split(qkv, 3, axis=2)
    q = q.reshape(B, T, n_head, hd).transpose(0, 2, 1, 3)
    k = k.reshape(B, T, n_head, hd).transpose(0, 2, 1, 3)
    v = v.reshape(B, T, n_head, hd).transpose(0, 2, 1, 3)
    s = jnp.einsum("bhqd,bhkd->bhqk", q, k) / math.sqrt(hd)
    mask = jnp.tril(jnp.ones((T, T), bool))
    s = jnp.where(mask, s, -jnp.inf)
    p = jax.nn.softmax(s, axis=-1)
    y = jnp.einsum("bhqk,bhkd->bhqd", p, v)
    y = y.transpose(0, 2, 1, 3).reshape(B, T, C)
    return (y.reshape(B * T, C) @ params["w_proj"] + params["b_proj"]).reshape(B, T, C)


# ----------------------------- Main -------------------------------------------

if __name__ == "__main__":
    # Small config: n_embd=32, n_head=4 (head_dim=8), batch=2, seq=8.
    B, T, n_embd, n_head = 2, 8, 32, 4

    key = jax.random.PRNGKey(0)
    k_x, k_wa, k_ba, k_wp, k_bp = jax.random.split(key, 5)

    x = jax.random.normal(k_x, (B, T, n_embd), dtype=jnp.float32)

    # Deterministic parameter init (nn.Linear shapes, stored as (in, out)).
    scale_a = 1.0 / math.sqrt(n_embd)
    params = {
        "w_attn": jax.random.uniform(k_wa, (n_embd, 3 * n_embd), jnp.float32,
                                     -scale_a, scale_a),
        "b_attn": jax.random.uniform(k_ba, (3 * n_embd,), jnp.float32,
                                     -scale_a, scale_a),
        "w_proj": jax.random.uniform(k_wp, (n_embd, n_embd), jnp.float32,
                                     -scale_a, scale_a),
        "b_proj": jax.random.uniform(k_bp, (n_embd,), jnp.float32,
                                     -scale_a, scale_a),
    }

    fwd = jax.jit(causal_self_attention, static_argnums=2)
    out = jax.block_until_ready(fwd(x, params, n_head))

    ref = reference(x, params, n_head)
    assert out.shape == (B, T, n_embd)
    # Slightly relaxed tolerance: the deferred softmax normalization uses the
    # hardware approximate reciprocal (EUP).
    assert jnp.allclose(out, ref, atol=5e-3, rtol=5e-3), (
        float(jnp.max(jnp.abs(out - ref))))

    print("KERNEL_OK")
</pallas_src>

<mosaic_0001>
module attributes {stable_mosaic.version = 11 : i64} {
  func.func @linear_kernel(%arg0: i32, %arg1: i32, %arg2: i32, %arg3: memref<16x32xf32, #tpu.memory_space<vmem>>, %arg4: memref<32x96xf32, #tpu.memory_space<vmem>>, %arg5: memref<1x96xf32, #tpu.memory_space<vmem>>, %arg6: memref<16x96xf32, #tpu.memory_space<vmem>>, %arg7: memref<16x96xf32, #tpu.memory_space<vmem>>) attributes {dimension_semantics = [#tpu.dimension_semantics<parallel>, #tpu.dimension_semantics<parallel>, #tpu.dimension_semantics<arbitrary>], iteration_bounds = array<i64: 1, 1, 1>, scalar_prefetch = 0 : i64, scratch_operands = 1 : i64, tpu.core_type = #tpu.core_type<tc>, window_params = [{transform_indices = @transform_0, window_bounds = array<i64: 16, 32>}, {transform_indices = @transform_1, window_bounds = array<i64: 32, 96>}, {transform_indices = @transform_2, window_bounds = array<i64: 1, 96>}, {transform_indices = @transform_3, window_bounds = array<i64: 16, 96>}]} {
    %c0_i32 = arith.constant 0 : i32
    %0 = arith.cmpi eq, %arg2, %c0_i32 : i32
    %1 = arith.extui %0 : i1 to i32
    %c0_i32_0 = arith.constant 0 : i32
    %2 = arith.cmpi ne, %1, %c0_i32_0 : i32
    scf.if %2 {
      %cst_10 = arith.constant 0.000000e+00 : f32
      %12 = vector.broadcast %cst_10 : f32 to vector<16x96xf32>
      %c0_11 = arith.constant 0 : index
      %c0_12 = arith.constant 0 : index
      %13 = vector.load %arg7[%c0_11, %c0_12] : memref<16x96xf32, #tpu.memory_space<vmem>>, vector<16x96xf32>
      tpu.vector_store %arg7[%c0_11, %c0_12], %12 {strides = array<i32>} : memref<16x96xf32, #tpu.memory_space<vmem>>, vector<16x96xf32>,
    } else {
    }
    %c0 = arith.constant 0 : index
    %c0_1 = arith.constant 0 : index
    %3 = vector.load %arg7[%c0, %c0_1] : memref<16x96xf32, #tpu.memory_space<vmem>>, vector<16x96xf32>
    %c0_2 = arith.constant 0 : index
    %c0_3 = arith.constant 0 : index
    %4 = vector.load %arg3[%c0_2, %c0_3] : memref<16x32xf32, #tpu.memory_space<vmem>>, vector<16x32xf32>
    %c0_4 = arith.constant 0 : index
    %c0_5 = arith.constant 0 : index
    %5 = vector.load %arg4[%c0_4, %c0_5] : memref<32x96xf32, #tpu.memory_space<vmem>>, vector<32x96xf32>
    %cst = arith.constant dense<0.000000e+00> : vector<16x96xf32>
    %6 = tpu.matmul %4, %5, %cst {dimension_numbers = #tpu.dot_dimension_numbers<[1], [0], [0], [1], [0, 0, 1, 1], [], []>} : vector<16x32xf32>, vector<32x96xf32>, vector<16x96xf32> -> vector<16x96xf32>
    %7 = arith.addf %3, %6 : vector<16x96xf32>
    %c0_6 = arith.constant 0 : index
    %c0_7 = arith.constant 0 : index
    %8 = vector.load %arg7[%c0_6, %c0_7] : memref<16x96xf32, #tpu.memory_space<vmem>>, vector<16x96xf32>
    tpu.vector_store %arg7[%c0_6, %c0_7], %7 {strides = array<i32>} : memref<16x96xf32, #tpu.memory_space<vmem>>, vector<16x96xf32>,
    %c0_i32_8 = arith.constant 0 : i32
    %9 = arith.cmpi eq, %arg2, %c0_i32_8 : i32
    %10 = arith.extui %9 : i1 to i32
    %c0_i32_9 = arith.constant 0 : i32
    %11 = arith.cmpi ne, %10, %c0_i32_9 : i32
    scf.if %11 {
      %c0_10 = arith.constant 0 : index
      %c0_11 = arith.constant 0 : index
      %12 = vector.load %arg7[%c0_10, %c0_11] : memref<16x96xf32, #tpu.memory_space<vmem>>, vector<16x96xf32>
      %c0_12 = arith.constant 0 : index
      %c0_13 = arith.constant 0 : index
      %13 = vector.load %arg5[%c0_12, %c0_13] : memref<1x96xf32, #tpu.memory_space<vmem>>, vector<1x96xf32>
      %14 = vector.broadcast %13 : vector<1x96xf32> to vector<16x96xf32>
      %15 = arith.addf %12, %14 : vector<16x96xf32>
      %c0_14 = arith.constant 0 : index
      %c0_15 = arith.constant 0 : index
      %16 = vector.load %arg6[%c0_14, %c0_15] : memref<16x96xf32, #tpu.memory_space<vmem>>, vector<16x96xf32>
      tpu.vector_store %arg6[%c0_14, %c0_15], %15 {strides = array<i32>} : memref<16x96xf32, #tpu.memory_space<vmem>>, vector<16x96xf32>,
    } else {
    }
    return
  }
  func.func @transform_0(%arg0: i32, %arg1: i32, %arg2: i32) -> (i32, i32) {
    %c0_i32 = arith.constant 0 : i32
    return %arg0, %arg2 : i32, i32
  }
  func.func @transform_1(%arg0: i32, %arg1: i32, %arg2: i32) -> (i32, i32) {
    %c0_i32 = arith.constant 0 : i32
    return %arg2, %arg1 : i32, i32
  }
  func.func @transform_2(%arg0: i32, %arg1: i32, %arg2: i32) -> (i32, i32) {
    %c0_i32 = arith.constant 0 : i32
    %c0_i32_0 = arith.constant 0 : i32
    return %c0_i32, %arg1 : i32, i32
  }
  func.func @transform_3(%arg0: i32, %arg1: i32, %arg2: i32) -> (i32, i32) {
    %c0_i32 = arith.constant 0 : i32
    return %arg0, %arg1 : i32, i32
  }
}

module attributes {stable_mosaic.version = 11 : i64} {
  func.func @linear_kernel(%arg0: i32, %arg1: i32, %arg2: i32, %arg3: memref<16x32xf32, #tpu.memory_space<vmem>>, %arg4: memref<32x32xf32, #tpu.memory_space<vmem>>, %arg5: memref<1x32xf32, #tpu.memory_space<vmem>>, %arg6: memref<16x32xf32, #tpu.memory_space<vmem>>, %arg7: memref<16x32xf32, #tpu.memory_space<vmem>>) attributes {dimension_semantics = [#tpu.dimension_semantics<parallel>, #tpu.dimension_semantics<parallel>, #tpu.dimension_semantics<arbitrary>], iteration_bounds = array<i64: 1, 1, 1>, scalar_prefetch = 0 : i64, scratch_operands = 1 : i64, tpu.core_type = #tpu.core_type<tc>, window_params = [{transform_indices = @transform_0, window_bounds = array<i64: 16, 32>}, {transform_indices = @transform_1, window_bounds = array<i64: 32, 32>}, {transform_indices = @transform_2, window_bounds = array<i64: 1, 32>}, {transform_indices = @transform_3, window_bounds = array<i64: 16, 32>}]} {
    %c0_i32 = arith.constant 0 : i32
    %0 = arith.cmpi eq, %arg2, %c0_i32 : i32
    %1 = arith.extui %0 : i1 to i32
    %c0_i32_0 = arith.constant 0 : i32
    %2 = arith.cmpi ne, %1, %c0_i32_0 : i32
    scf.if %2 {
      %cst_10 = arith.constant 0.000000e+00 : f32
      %12 = vector.broadcast %cst_10 : f32 to vector<16x32xf32>
      %c0_11 = arith.constant 0 : index
      %c0_12 = arith.constant 0 : index
      %13 = vector.load %arg7[%c0_11, %c0_12] : memref<16x32xf32, #tpu.memory_space<vmem>>, vector<16x32xf32>
      tpu.vector_store %arg7[%c0_11, %c0_12], %12 {strides = array<i32>} : memref<16x32xf32, #tpu.memory_space<vmem>>, vector<16x32xf32>,
    } else {
    }
    %c0 = arith.constant 0 : index
    %c0_1 = arith.constant 0 : index
    %3 = vector.load %arg7[%c0, %c0_1] : memref<16x32xf32, #tpu.memory_space<vmem>>, vector<16x32xf32>
    %c0_2 = arith.constant 0 : index
    %c0_3 = arith.constant 0 : index
    %4 = vector.load %arg3[%c0_2, %c0_3] : memref<16x32xf32, #tpu.memory_space<vmem>>, vector<16x32xf32>
    %c0_4 = arith.constant 0 : index
    %c0_5 = arith.constant 0 : index
    %5 = vector.load %arg4[%c0_4, %c0_5] : memref<32x32xf32, #tpu.memory_space<vmem>>, vector<32x32xf32>
    %cst = arith.constant dense<0.000000e+00> : vector<16x32xf32>
    %6 = tpu.matmul %4, %5, %cst {dimension_numbers = #tpu.dot_dimension_numbers<[1], [0], [0], [1], [0, 0, 1, 1], [], []>} : vector<16x32xf32>, vector<32x32xf32>, vector<16x32xf32> -> vector<16x32xf32>
    %7 = arith.addf %3, %6 : vector<16x32xf32>
    %c0_6 = arith.constant 0 : index
    %c0_7 = arith.constant 0 : index
    %8 = vector.load %arg7[%c0_6, %c0_7] : memref<16x32xf32, #tpu.memory_space<vmem>>, vector<16x32xf32>
    tpu.vector_store %arg7[%c0_6, %c0_7], %7 {strides = array<i32>} : memref<16x32xf32, #tpu.memory_space<vmem>>, vector<16x32xf32>,
    %c0_i32_8 = arith.constant 0 : i32
    %9 = arith.cmpi eq, %arg2, %c0_i32_8 : i32
    %10 = arith.extui %9 : i1 to i32
    %c0_i32_9 = arith.constant 0 : i32
    %11 = arith.cmpi ne, %10, %c0_i32_9 : i32
    scf.if %11 {
      %c0_10 = arith.constant 0 : index
      %c0_11 = arith.constant 0 : index
      %12 = vector.load %arg7[%c0_10, %c0_11] : memref<16x32xf32, #tpu.memory_space<vmem>>, vector<16x32xf32>
      %c0_12 = arith.constant 0 : index
      %c0_13 = arith.constant 0 : index
      %13 = vector.load %arg5[%c0_12, %c0_13] : memref<1x32xf32, #tpu.memory_space<vmem>>, vector<1x32xf32>
      %14 = vector.broadcast %13 : vector<1x32xf32> to vector<16x32xf32>
      %15 = arith.addf %12, %14 : vector<16x32xf32>
      %c0_14 = arith.constant 0 : index
      %c0_15 = arith.constant 0 : index
      %16 = vector.load %arg6[%c0_14, %c0_15] : memref<16x32xf32, #tpu.memory_space<vmem>>, vector<16x32xf32>
      tpu.vector_store %arg6[%c0_14, %c0_15], %15 {strides = array<i32>} : memref<16x32xf32, #tpu.memory_space<vmem>>, vector<16x32xf32>,
    } else {
    }
    return
  }
  func.func @transform_0(%arg0: i32, %arg1: i32, %arg2: i32) -> (i32, i32) {
    %c0_i32 = arith.constant 0 : i32
    return %arg0, %arg2 : i32, i32
  }
  func.func @transform_1(%arg0: i32, %arg1: i32, %arg2: i32) -> (i32, i32) {
    %c0_i32 = arith.constant 0 : i32
    return %arg2, %arg1 : i32, i32
  }
  func.func @transform_2(%arg0: i32, %arg1: i32, %arg2: i32) -> (i32, i32) {
    %c0_i32 = arith.constant 0 : i32
    %c0_i32_0 = arith.constant 0 : i32
    return %c0_i32, %arg1 : i32, i32
  }
  func.func @transform_3(%arg0: i32, %arg1: i32, %arg2: i32) -> (i32, i32) {
    %c0_i32 = arith.constant 0 : i32
    return %arg0, %arg1 : i32, i32
  }
}

module attributes {stable_mosaic.version = 11 : i64} {
  func.func @flash_attention_kernel(%arg0: i32, %arg1: i32, %arg2: i32, %arg3: memref<1x8x32xf32, #tpu.memory_space<vmem>>, %arg4: memref<1x8x32xf32, #tpu.memory_space<vmem>>, %arg5: memref<1x8x32xf32, #tpu.memory_space<vmem>>, %arg6: memref<1x8x32xf32, #tpu.memory_space<vmem>>, %arg7: memref<4x8x1xf32, #tpu.memory_space<vmem>>, %arg8: memref<4x8x1xf32, #tpu.memory_space<vmem>>, %arg9: memref<4x8x8xf32, #tpu.memory_space<vmem>>) attributes {dimension_semantics = [#tpu.dimension_semantics<parallel>, #tpu.dimension_semantics<parallel>, #tpu.dimension_semantics<arbitrary>], iteration_bounds = array<i64: 2, 1, 1>, scalar_prefetch = 0 : i64, scratch_operands = 3 : i64, tpu.core_type = #tpu.core_type<tc>, window_params = [{transform_indices = @transform_0, window_bounds = array<i64: 1, 8, 32>}, {transform_indices = @transform_1, window_bounds = array<i64: 1, 8, 32>}, {transform_indices = @transform_2, window_bounds = array<i64: 1, 8, 32>}, {transform_indices = @transform_3, window_bounds = array<i64: 1, 8, 32>}]} {
    %c0_i32 = arith.constant 0 : i32
    %0 = arith.cmpi eq, %arg2, %c0_i32 : i32
    %1 = arith.extui %0 : i1 to i32
    %c0_i32_0 = arith.constant 0 : i32
    %2 = arith.cmpi ne, %1, %c0_i32_0 : i32
    scf.if %2 {
      %cst = arith.constant 0xFF800000 : f32
      %12 = vector.broadcast %cst : f32 to vector<4x8x1xf32>
      %c0 = arith.constant 0 : index
      %c0_5 = arith.constant 0 : index
      %c0_6 = arith.constant 0 : index
      %13 = vector.load %arg7[%c0, %c0_5, %c0_6] : memref<4x8x1xf32, #tpu.memory_space<vmem>>, vector<4x8x1xf32>
      tpu.vector_store %arg7[%c0, %c0_5, %c0_6], %12 {strides = array<i32>} : memref<4x8x1xf32, #tpu.memory_space<vmem>>, vector<4x8x1xf32>,
      %cst_7 = arith.constant 0.000000e+00 : f32
      %14 = vector.broadcast %cst_7 : f32 to vector<4x8x1xf32>
      %c0_8 = arith.constant 0 : index
      %c0_9 = arith.constant 0 : index
      %c0_10 = arith.constant 0 : index
      %15 = vector.load %arg8[%c0_8, %c0_9, %c0_10] : memref<4x8x1xf32, #tpu.memory_space<vmem>>, vector<4x8x1xf32>
      tpu.vector_store %arg8[%c0_8, %c0_9, %c0_10], %14 {strides = array<i32>} : memref<4x8x1xf32, #tpu.memory_space<vmem>>, vector<4x8x1xf32>,
      %cst_11 = arith.constant 0.000000e+00 : f32
      %16 = vector.broadcast %cst_11 : f32 to vector<4x8x8xf32>
      %c0_12 = arith.constant 0 : index
      %c0_13 = arith.constant 0 : index
      %c0_14 = arith.constant 0 : index
      %17 = vector.load %arg9[%c0_12, %c0_13, %c0_14] : memref<4x8x8xf32, #tpu.memory_space<vmem>>, vector<4x8x8xf32>
      tpu.vector_store %arg9[%c0_12, %c0_13, %c0_14], %16 {strides = array<i32>} : memref<4x8x8xf32, #tpu.memory_space<vmem>>, vector<4x8x8xf32>,
    } else {
    }
    %c8_i32 = arith.constant 8 : i32
    %3 = arith.muli %arg2, %c8_i32 : i32
    %c1_i32 = arith.constant 1 : i32
    %4 = arith.addi %arg1, %c1_i32 : i32
    %c8_i32_1 = arith.constant 8 : i32
    %5 = arith.muli %4, %c8_i32_1 : i32
    %6 = arith.cmpi slt, %3, %5 : i32
    %7 = arith.extui %6 : i1 to i32
    %c0_i32_2 = arith.constant 0 : i32
    %8 = arith.cmpi ne, %7, %c0_i32_2 : i32
    scf.if %8 {
      %c0 = arith.constant 0 : index
      %c0_5 = arith.constant 0 : index
      %c0_6 = arith.constant 0 : index
      %12 = vector.load %arg3[%c0, %c0_5, %c0_6] : memref<1x8x32xf32, #tpu.memory_space<vmem>>, vector<1x8x32xf32>
      %13 = vector.shape_cast %12 : vector<1x8x32xf32> to vector<8x32xf32>
      %cst = arith.constant 0.353553385 : f32
      %14 = vector.broadcast %cst : f32 to vector<8x32xf32>
      %15 = arith.mulf %13, %14 : vector<8x32xf32>
      %c0_7 = arith.constant 0 : index
      %c0_8 = arith.constant 0 : index
      %c0_9 = arith.constant 0 : index
      %16 = vector.load %arg4[%c0_7, %c0_8, %c0_9] : memref<1x8x32xf32, #tpu.memory_space<vmem>>, vector<1x8x32xf32>
      %17 = vector.shape_cast %16 : vector<1x8x32xf32> to vector<8x32xf32>
      %c0_10 = arith.constant 0 : index
      %c0_11 = arith.constant 0 : index
      %c0_12 = arith.constant 0 : index
      %18 = vector.load %arg5[%c0_10, %c0_11, %c0_12] : memref<1x8x32xf32, #tpu.memory_space<vmem>>, vector<1x8x32xf32>
      %19 = vector.shape_cast %18 : vector<1x8x32xf32> to vector<8x32xf32>
      %c8_i32_13 = arith.constant 8 : i32
      %20 = arith.muli %arg1, %c8_i32_13 : i32
      %21 = tpu.iota {dimensions = array<i32: 0>} : vector<8x8xi32>
      %22 = vector.broadcast %20 : i32 to vector<8x8xi32>
      %23 = arith.addi %22, %21 : vector<8x8xi32>
      %c8_i32_14 = arith.constant 8 : i32
      %24 = arith.muli %arg2, %c8_i32_14 : i32
      %25 = tpu.iota {dimensions = array<i32: 1>} : vector<8x8xi32>
      %26 = vector.broadcast %24 : i32 to vector<8x8xi32>
      %27 = arith.addi %26, %25 : vector<8x8xi32>
      %28 = arith.cmpi sle, %27, %23 : vector<8x8xi32>
      %29 = vector.extract_strided_slice %15 {offsets = [0, 0], sizes = [8, 8], strides = [1, 1]} : vector<8x32xf32> to vector<8x8xf32>
      %30 = vector.extract_strided_slice %17 {offsets = [0, 0], sizes = [8, 8], strides = [1, 1]} : vector<8x32xf32> to vector<8x8xf32>
      %31 = vector.extract_strided_slice %19 {offsets = [0, 0], sizes = [8, 8], strides = [1, 1]} : vector<8x32xf32> to vector<8x8xf32>
      %cst_15 = arith.constant dense<0.000000e+00> : vector<8x8xf32>
      %32 = tpu.matmul %29, %30, %cst_15 {dimension_numbers = #tpu.dot_dimension_numbers<[1], [1], [0], [0], [0, 0, 1, 0], [], []>} : vector<8x8xf32>, vector<8x8xf32>, vector<8x8xf32> -> vector<8x8xf32>
      %cst_16 = arith.constant 0xFF800000 : f32
      %33 = vector.broadcast %cst_16 : f32 to vector<8x8xf32>
      %34 = arith.select %28, %32, %33 : vector<8x8xi1>, vector<8x8xf32>
      %c0_17 = arith.constant 0 : index
      %c0_18 = arith.constant 0 : index
      %c0_19 = arith.constant 0 : index
      %35 = vector.load %arg7[%c0_17, %c0_18, %c0_19] : memref<4x8x1xf32, #tpu.memory_space<vmem>>, vector<1x8x1xf32>
      %36 = vector.shape_cast %35 : vector<1x8x1xf32> to vector<8x1xf32>
      %cst_20 = arith.constant dense<0xFF800000> : vector<8xf32>
      %37 = vector.multi_reduction <maximumf>, %34, %cst_20 [1] : vector<8x8xf32> to vector<8xf32>
      %38 = vector.shape_cast %37 : vector<8xf32> to vector<8x1xf32>
      %39 = arith.maximumf %36, %38 : vector<8x1xf32>
      %40 = arith.subf %36, %39 : vector<8x1xf32>
      %41 = math.exp %40 : vector<8x1xf32>
      %42 = vector.broadcast %39 : vector<8x1xf32> to vector<8x8xf32>
      %43 = arith.subf %34, %42 : vector<8x8xf32>
      %44 = math.exp %43 : vector<8x8xf32>
      %c0_21 = arith.constant 0 : index
      %c0_22 = arith.constant 0 : index
      %c0_23 = arith.constant 0 : index
      %45 = vector.load %arg8[%c0_21, %c0_22, %c0_23] : memref<4x8x1xf32, #tpu.memory_space<vmem>>, vector<1x8x1xf32>
      %46 = vector.shape_cast %45 : vector<1x8x1xf32> to vector<8x1xf32>
      %47 = arith.mulf %41, %46 : vector<8x1xf32>
      %cst_24 = arith.constant dense<0.000000e+00> : vector<8xf32>
      %48 = vector.multi_reduction <add>, %44, %cst_24 [1] : vector<8x8xf32> to vector<8xf32>
      %49 = vector.shape_cast %48 : vector<8xf32> to vector<8x1xf32>
      %50 = arith.addf %47, %49 : vector<8x1xf32>
      %c0_25 = arith.constant 0 : index
      %c0_26 = arith.constant 0 : index
      %c0_27 = arith.constant 0 : index
      %51 = vector.load %arg8[%c0_25, %c0_26, %c0_27] : memref<4x8x1xf32, #tpu.memory_space<vmem>>, vector<1x8x1xf32>
      %52 = vector.shape_cast %51 : vector<1x8x1xf32> to vector<8x1xf32>
      %53 = vector.shape_cast %50 : vector<8x1xf32> to vector<1x8x1xf32>
      tpu.vector_store %arg8[%c0_25, %c0_26, %c0_27], %53 {strides = array<i32>} : memref<4x8x1xf32, #tpu.memory_space<vmem>>, vector<1x8x1xf32>,
      %c0_28 = arith.constant 0 : index
      %c0_29 = arith.constant 0 : index
      %c0_30 = arith.constant 0 : index
      %54 = vector.load %arg9[%c0_28, %c0_29, %c0_30] : memref<4x8x8xf32, #tpu.memory_space<vmem>>, vector<1x8x8xf32>
      %55 = vector.shape_cast %54 : vector<1x8x8xf32> to vector<8x8xf32>
      %56 = vector.broadcast %41 : vector<8x1xf32> to vector<8x8xf32>
      %57 = arith.mulf %56, %55 : vector<8x8xf32>
      %cst_31 = arith.constant dense<0.000000e+00> : vector<8x8xf32>
      %58 = tpu.matmul %44, %31, %cst_31 {dimension_numbers = #tpu.dot_dimension_numbers<[1], [0], [0], [1], [0, 0, 1, 1], [], []>} : vector<8x8xf32>, vector<8x8xf32>, vector<8x8xf32> -> vector<8x8xf32>
      %59 = arith.addf %57, %58 : vector<8x8xf32>
      %c0_32 = arith.constant 0 : index
      %c0_33 = arith.constant 0 : index
      %c0_34 = arith.constant 0 : index
      %60 = vector.load %arg9[%c0_32, %c0_33, %c0_34] : memref<4x8x8xf32, #tpu.memory_space<vmem>>, vector<1x8x8xf32>
      %61 = vector.shape_cast %60 : vector<1x8x8xf32> to vector<8x8xf32>
      %62 = vector.shape_cast %59 : vector<8x8xf32> to vector<1x8x8xf32>
      tpu.vector_store %arg9[%c0_32, %c0_33, %c0_34], %62 {strides = array<i32>} : memref<4x8x8xf32, #tpu.memory_space<vmem>>, vector<1x8x8xf32>,
      %c0_35 = arith.constant 0 : index
      %c0_36 = arith.constant 0 : index
      %c0_37 = arith.constant 0 : index
      %63 = vector.load %arg7[%c0_35, %c0_36, %c0_37] : memref<4x8x1xf32, #tpu.memory_space<vmem>>, vector<1x8x1xf32>
      %64 = vector.shape_cast %63 : vector<1x8x1xf32> to vector<8x1xf32>
      %65 = vector.shape_cast %39 : vector<8x1xf32> to vector<1x8x1xf32>
      tpu.vector_store %arg7[%c0_35, %c0_36, %c0_37], %65 {strides = array<i32>} : memref<4x8x1xf32, #tpu.memory_space<vmem>>, vector<1x8x1xf32>,
      %66 = vector.extract_strided_slice %15 {offsets = [0, 8], sizes = [8, 8], strides = [1, 1]} : vector<8x32xf32> to vector<8x8xf32>
      %67 = vector.extract_strided_slice %17 {offsets = [0, 8], sizes = [8, 8], strides = [1, 1]} : vector<8x32xf32> to vector<8x8xf32>
      %68 = vector.extract_strided_slice %19 {offsets = [0, 8], sizes = [8, 8], strides = [1, 1]} : vector<8x32xf32> to vector<8x8xf32>
      %cst_38 = arith.constant dense<0.000000e+00> : vector<8x8xf32>
      %69 = tpu.matmul %66, %67, %cst_38 {dimension_numbers = #tpu.dot_dimension_numbers<[1], [1], [0], [0], [0, 0, 1, 0], [], []>} : vector<8x8xf32>, vector<8x8xf32>, vector<8x8xf32> -> vector<8x8xf32>
      %cst_39 = arith.constant 0xFF800000 : f32
      %70 = vector.broadcast %cst_39 : f32 to vector<8x8xf32>
      %71 = arith.select %28, %69, %70 : vector<8x8xi1>, vector<8x8xf32>
      %c1 = arith.constant 1 : index
      %c0_40 = arith.constant 0 : index
      %c0_41 = arith.constant 0 : index
      %72 = vector.load %arg7[%c1, %c0_40, %c0_41] : memref<4x8x1xf32, #tpu.memory_space<vmem>>, vector<1x8x1xf32>
      %73 = vector.shape_cast %72 : vector<1x8x1xf32> to vector<8x1xf32>
      %cst_42 = arith.constant dense<0xFF800000> : vector<8xf32>
      %74 = vector.multi_reduction <maximumf>, %71, %cst_42 [1] : vector<8x8xf32> to vector<8xf32>
      %75 = vector.shape_cast %74 : vector<8xf32> to vector<8x1xf32>
      %76 = arith.maximumf %73, %75 : vector<8x1xf32>
      %77 = arith.subf %73, %76 : vector<8x1xf32>
      %78 = math.exp %77 : vector<8x1xf32>
      %79 = vector.broadcast %76 : vector<8x1xf32> to vector<8x8xf32>
      %80 = arith.subf %71, %79 : vector<8x8xf32>
      %81 = math.exp %80 : vector<8x8xf32>
      %c1_43 = arith.constant 1 : index
      %c0_44 = arith.constant 0 : index
      %c0_45 = arith.constant 0 : index
      %82 = vector.load %arg8[%c1_43, %c0_44, %c0_45] : memref<4x8x1xf32, #tpu.memory_space<vmem>>, vector<1x8x1xf32>
      %83 = vector.shape_cast %82 : vector<1x8x1xf32> to vector<8x1xf32>
      %84 = arith.mulf %78, %83 : vector<8x1xf32>
      %cst_46 = arith.constant dense<0.000000e+00> : vector<8xf32>
      %85 = vector.multi_reduction <add>, %81, %cst_46 [1] : vector<8x8xf32> to vector<8xf32>
      %86 = vector.shape_cast %85 : vector<8xf32> to vector<8x1xf32>
      %87 = arith.addf %84, %86 : vector<8x1xf32>
      %c1_47 = arith.constant 1 : index
      %c0_48 = arith.constant 0 : index
      %c0_49 = arith.constant 0 : index
      %88 = vector.load %arg8[%c1_47, %c0_48, %c0_49] : memref<4x8x1xf32, #tpu.memory_space<vmem>>, vector<1x8x1xf32>
      %89 = vector.shape_cast %88 : vector<1x8x1xf32> to vector<8x1xf32>
      %90 = vector.shape_cast %87 : vector<8x1xf32> to vector<1x8x1xf32>
      tpu.vector_store %arg8[%c1_47, %c0_48, %c0_49], %90 {strides = array<i32>} : memref<4x8x1xf32, #tpu.memory_space<vmem>>, vector<1x8x1xf32>,
      %c1_50 = arith.constant 1 : index
      %c0_51 = arith.constant 0 : index
      %c0_52 = arith.constant 0 : index
      %91 = vector.load %arg9[%c1_50, %c0_51, %c0_52] : memref<4x8x8xf32, #tpu.memory_space<vmem>>, vector<1x8x8xf32>
      %92 = vector.shape_cast %91 : vector<1x8x8xf32> to vector<8x8xf32>
      %93 = vector.broadcast %78 : vector<8x1xf32> to vector<8x8xf32>
      %94 = arith.mulf %93, %92 : vector<8x8xf32>
      %cst_53 = arith.constant dense<0.000000e+00> : vector<8x8xf32>
      %95 = tpu.matmul %81, %68, %cst_53 {dimension_numbers = #tpu.dot_dimension_numbers<[1], [0], [0], [1], [0, 0, 1, 1], [], []>} : vector<8x8xf32>, vector<8x8xf32>, vector<8x8xf32> -> vector<8x8xf32>
      %96 = arith.addf %94, %95 : vector<8x8xf32>
      %c1_54 = arith.constant 1 : index
      %c0_55 = arith.constant 0 : index
      %c0_56 = arith.constant 0 : index
      %97 = vector.load %arg9[%c1_54, %c0_55, %c0_56] : memref<4x8x8xf32, #tpu.memory_space<vmem>>, vector<1x8x8xf32>
      %98 = vector.shape_cast %97 : vector<1x8x8xf32> to vector<8x8xf32>
      %99 = vector.shape_cast %96 : vector<8x8xf32> to vector<1x8x8xf32>
      tpu.vector_store %arg9[%c1_54, %c0_55, %c0_56], %99 {strides = array<i32>} : memref<4x8x8xf32, #tpu.memory_space<vmem>>, vector<1x8x8xf32>,
      %c1_57 = arith.constant 1 : index
      %c0_58 = arith.constant 0 : index
      %c0_59 = arith.constant 0 : index
      %100 = vector.load %arg7[%c1_57, %c0_58, %c0_59] : memref<4x8x1xf32, #tpu.memory_space<vmem>>, vector<1x8x1xf32>
      %101 = vector.shape_cast %100 : vector<1x8x1xf32> to vector<8x1xf32>
      %102 = vector.shape_cast %76 : vector<8x1xf32> to vector<1x8x1xf32>
      tpu.vector_store %arg7[%c1_57, %c0_58, %c0_59], %102 {strides = array<i32>} : memref<4x8x1xf32, #tpu.memory_space<vmem>>, vector<1x8x1xf32>,
      %103 = vector.extract_strided_slice %15 {offsets = [0, 16], sizes = [8, 8], strides = [1, 1]} : vector<8x32xf32> to vector<8x8xf32>
      %104 = vector.extract_strided_slice %17 {offsets = [0, 16], sizes = [8, 8], strides = [1, 1]} : vector<8x32xf32> to vector<8x8xf32>
      %105 = vector.extract_strided_slice %19 {offsets = [0, 16], sizes = [8, 8], strides = [1, 1]} : vector<8x32xf32> to vector<8x8xf32>
      %cst_60 = arith.constant dense<0.000000e+00> : vector<8x8xf32>
      %106 = tpu.matmul %103, %104, %cst_60 {dimension_numbers = #tpu.dot_dimension_numbers<[1], [1], [0], [0], [0, 0, 1, 0], [], []>} : vector<8x8xf32>, vector<8x8xf32>, vector<8x8xf32> -> vector<8x8xf32>
      %cst_61 = arith.constant 0xFF800000 : f32
      %107 = vector.broadcast %cst_61 : f32 to vector<8x8xf32>
      %108 = arith.select %28, %106, %107 : vector<8x8xi1>, vector<8x8xf32>
      %c2 = arith.constant 2 : index
      %c0_62 = arith.constant 0 : index
      %c0_63 = arith.constant 0 : index
      %109 = vector.load %arg7[%c2, %c0_62, %c0_63] : memref<4x8x1xf32, #tpu.memory_space<vmem>>, vector<1x8x1xf32>
      %110 = vector.shape_cast %109 : vector<1x8x1xf32> to vector<8x1xf32>
      %cst_64 = arith.constant dense<0xFF800000> : vector<8xf32>
      %111 = vector.multi_reduction <maximumf>, %108, %cst_64 [1] : vector<8x8xf32> to vector<8xf32>
      %112 = vector.shape_cast %111 : vector<8xf32> to vector<8x1xf32>
      %113 = arith.maximumf %110, %112 : vector<8x1xf32>
      %114 = arith.subf %110, %113 : vector<8x1xf32>
      %115 = math.exp %114 : vector<8x1xf32>
      %116 = vector.broadcast %113 : vector<8x1xf32> to vector<8x8xf32>
      %117 = arith.subf %108, %116 : vector<8x8xf32>
      %118 = math.exp %117 : vector<8x8xf32>
      %c2_65 = arith.constant 2 : index
      %c0_66 = arith.constant 0 : index
      %c0_67 = arith.constant 0 : index
      %119 = vector.load %arg8[%c2_65, %c0_66, %c0_67] : memref<4x8x1xf32, #tpu.memory_space<vmem>>, vector<1x8x1xf32>
      %120 = vector.shape_cast %119 : vector<1x8x1xf32> to vector<8x1xf32>
      %121 = arith.mulf %115, %120 : vector<8x1xf32>
      %cst_68 = arith.constant dense<0.000000e+00> : vector<8xf32>
      %122 = vector.multi_reduction <add>, %118, %cst_68 [1] : vector<8x8xf32> to vector<8xf32>
      %123 = vector.shape_cast %122 : vector<8xf32> to vector<8x1xf32>
      %124 = arith.addf %121, %123 : vector<8x1xf32>
      %c2_69 = arith.constant 2 : index
      %c0_70 = arith.constant 0 : index
      %c0_71 = arith.constant 0 : index
      %125 = vector.load %arg8[%c2_69, %c0_70, %c0_71] : memref<4x8x1xf32, #tpu.memory_space<vmem>>, vector<1x8x1xf32>
      %126 = vector.shape_cast %125 : vector<1x8x1xf32> to vector<8x1xf32>
      %127 = vector.shape_cast %124 : vector<8x1xf32> to vector<1x8x1xf32>
      tpu.vector_store %arg8[%c2_69, %c0_70, %c0_71], %127 {strides = array<i32>} : memref<4x8x1xf32, #tpu.memory_space<vmem>>, vector<1x8x1xf32>,
      %c2_72 = arith.constant 2 : index
      %c0_73 = arith.constant 0 : index
      %c0_74 = arith.constant 0 : index
      %128 = vector.load %arg9[%c2_72, %c0_73, %c0_74] : memref<4x8x8xf32, #tpu.memory_space<vmem>>, vector<1x8x8xf32>
      %129 = vector.shape_cast %128 : vector<1x8x8xf32> to vector<8x8xf32>
      %130 = vector.broadcast %115 : vector<8x1xf32> to vector<8x8xf32>
      %131 = arith.mulf %130, %129 : vector<8x8xf32>
      %cst_75 = arith.constant dense<0.000000e+00> : vector<8x8xf32>
      %132 = tpu.matmul %118, %105, %cst_75 {dimension_numbers = #tpu.dot_dimension_numbers<[1], [0], [0], [1], [0, 0, 1, 1], [], []>} : vector<8x8xf32>, vector<8x8xf32>, vector<8x8xf32> -> vector<8x8xf32>
      %133 = arith.addf %131, %132 : vector<8x8xf32>
      %c2_76 = arith.constant 2 : index
      %c0_77 = arith.constant 0 : index
      %c0_78 = arith.constant 0 : index
      %134 = vector.load %arg9[%c2_76, %c0_77, %c0_78] : memref<4x8x8xf32, #tpu.memory_space<vmem>>, vector<1x8x8xf32>
      %135 = vector.shape_cast %134 : vector<1x8x8xf32> to vector<8x8xf32>
      %136 = vector.shape_cast %133 : vector<8x8xf32> to vector<1x8x8xf32>
      tpu.vector_store %arg9[%c2_76, %c0_77, %c0_78], %136 {strides = array<i32>} : memref<4x8x8xf32, #tpu.memory_space<vmem>>, vector<1x8x8xf32>,
      %c2_79 = arith.constant 2 : index
      %c0_80 = arith.constant 0 : index
      %c0_81 = arith.constant 0 : index
      %137 = vector.load %arg7[%c2_79, %c0_80, %c0_81] : memref<4x8x1xf32, #tpu.memory_space<vmem>>, vector<1x8x1xf32>
      %138 = vector.shape_cast %137 : vector<1x8x1xf32> to vector<8x1xf32>
      %139 = vector.shape_cast %113 : vector<8x1xf32> to vector<1x8x1xf32>
      tpu.vector_store %arg7[%c2_79, %c0_80, %c0_81], %139 {strides = array<i32>} : memref<4x8x1xf32, #tpu.memory_space<vmem>>, vector<1x8x1xf32>,
      %140 = vector.extract_strided_slice %15 {offsets = [0, 24], sizes = [8, 8], strides = [1, 1]} : vector<8x32xf32> to vector<8x8xf32>
      %141 = vector.extract_strided_slice %17 {offsets = [0, 24], sizes = [8, 8], strides = [1, 1]} : vector<8x32xf32> to vector<8x8xf32>
      %142 = vector.extract_strided_slice %19 {offsets = [0, 24], sizes = [8, 8], strides = [1, 1]} : vector<8x32xf32> to vector<8x8xf32>
      %cst_82 = arith.constant dense<0.000000e+00> : vector<8x8xf32>
      %143 = tpu.matmul %140, %141, %cst_82 {dimension_numbers = #tpu.dot_dimension_numbers<[1], [1], [0], [0], [0, 0, 1, 0], [], []>} : vector<8x8xf32>, vector<8x8xf32>, vector<8x8xf32> -> vector<8x8xf32>
      %cst_83 = arith.constant 0xFF800000 : f32
      %144 = vector.broadcast %cst_83 : f32 to vector<8x8xf32>
      %145 = arith.select %28, %143, %144 : vector<8x8xi1>, vector<8x8xf32>
      %c3 = arith.constant 3 : index
      %c0_84 = arith.constant 0 : index
      %c0_85 = arith.constant 0 : index
      %146 = vector.load %arg7[%c3, %c0_84, %c0_85] : memref<4x8x1xf32, #tpu.memory_space<vmem>>, vector<1x8x1xf32>
      %147 = vector.shape_cast %146 : vector<1x8x1xf32> to vector<8x1xf32>
      %cst_86 = arith.constant dense<0xFF800000> : vector<8xf32>
      %148 = vector.multi_reduction <maximumf>, %145, %cst_86 [1] : vector<8x8xf32> to vector<8xf32>
      %149 = vector.shape_cast %148 : vector<8xf32> to vector<8x1xf32>
      %150 = arith.maximumf %147, %149 : vector<8x1xf32>
      %151 = arith.subf %147, %150 : vector<8x1xf32>
      %152 = math.exp %151 : vector<8x1xf32>
      %153 = vector.broadcast %150 : vector<8x1xf32> to vector<8x8xf32>
      %154 = arith.subf %145, %153 : vector<8x8xf32>
      %155 = math.exp %154 : vector<8x8xf32>
      %c3_87 = arith.constant 3 : index
      %c0_88 = arith.constant 0 : index
      %c0_89 = arith.constant 0 : index
      %156 = vector.load %arg8[%c3_87, %c0_88, %c0_89] : memref<4x8x1xf32, #tpu.memory_space<vmem>>, vector<1x8x1xf32>
      %157 = vector.shape_cast %156 : vector<1x8x1xf32> to vector<8x1xf32>
      %158 = arith.mulf %152, %157 : vector<8x1xf32>
      %cst_90 = arith.constant dense<0.000000e+00> : vector<8xf32>
      %159 = vector.multi_reduction <add>, %155, %cst_90 [1] : vector<8x8xf32> to vector<8xf32>
      %160 = vector.shape_cast %159 : vector<8xf32> to vector<8x1xf32>
      %161 = arith.addf %158, %160 : vector<8x1xf32>
      %c3_91 = arith.constant 3 : index
      %c0_92 = arith.constant 0 : index
      %c0_93 = arith.constant 0 : index
      %162 = vector.load %arg8[%c3_91, %c0_92, %c0_93] : memref<4x8x1xf32, #tpu.memory_space<vmem>>, vector<1x8x1xf32>
      %163 = vector.shape_cast %162 : vector<1x8x1xf32> to vector<8x1xf32>
      %164 = vector.shape_cast %161 : vector<8x1xf32> to vector<1x8x1xf32>
      tpu.vector_store %arg8[%c3_91, %c0_92, %c0_93], %164 {strides = array<i32>} : memref<4x8x1xf32, #tpu.memory_space<vmem>>, vector<1x8x1xf32>,
      %c3_94 = arith.constant 3 : index
      %c0_95 = arith.constant 0 : index
      %c0_96 = arith.constant 0 : index
      %165 = vector.load %arg9[%c3_94, %c0_95, %c0_96] : memref<4x8x8xf32, #tpu.memory_space<vmem>>, vector<1x8x8xf32>
      %166 = vector.shape_cast %165 : vector<1x8x8xf32> to vector<8x8xf32>
      %167 = vector.broadcast %152 : vector<8x1xf32> to vector<8x8xf32>
      %168 = arith.mulf %167, %166 : vector<8x8xf32>
      %cst_97 = arith.constant dense<0.000000e+00> : vector<8x8xf32>
      %169 = tpu.matmul %155, %142, %cst_97 {dimension_numbers = #tpu.dot_dimension_numbers<[1], [0], [0], [1], [0, 0, 1, 1], [], []>} : vector<8x8xf32>, vector<8x8xf32>, vector<8x8xf32> -> vector<8x8xf32>
      %170 = arith.addf %168, %169 : vector<8x8xf32>
      %c3_98 = arith.constant 3 : index
      %c0_99 = arith.constant 0 : index
      %c0_100 = arith.constant 0 : index
      %171 = vector.load %arg9[%c3_98, %c0_99, %c0_100] : memref<4x8x8xf32, #tpu.memory_space<vmem>>, vector<1x8x8xf32>
      %172 = vector.shape_cast %171 : vector<1x8x8xf32> to vector<8x8xf32>
      %173 = vector.shape_cast %170 : vector<8x8xf32> to vector<1x8x8xf32>
      tpu.vector_store %arg9[%c3_98, %c0_99, %c0_100], %173 {strides = array<i32>} : memref<4x8x8xf32, #tpu.memory_space<vmem>>, vector<1x8x8xf32>,
      %c3_101 = arith.constant 3 : index
      %c0_102 = arith.constant 0 : index
      %c0_103 = arith.constant 0 : index
      %174 = vector.load %arg7[%c3_101, %c0_102, %c0_103] : memref<4x8x1xf32, #tpu.memory_space<vmem>>, vector<1x8x1xf32>
      %175 = vector.shape_cast %174 : vector<1x8x1xf32> to vector<8x1xf32>
      %176 = vector.shape_cast %150 : vector<8x1xf32> to vector<1x8x1xf32>
      tpu.vector_store %arg7[%c3_101, %c0_102, %c0_103], %176 {strides = array<i32>} : memref<4x8x1xf32, #tpu.memory_space<vmem>>, vector<1x8x1xf32>,
    } else {
    }
    %c0_i32_3 = arith.constant 0 : i32
    %9 = arith.cmpi eq, %arg2, %c0_i32_3 : i32
    %10 = arith.extui %9 : i1 to i32
    %c0_i32_4 = arith.constant 0 : i32
    %11 = arith.cmpi ne, %10, %c0_i32_4 : i32
    scf.if %11 {
      %c0 = arith.constant 0 : index
      %c0_5 = arith.constant 0 : index
      %c0_6 = arith.constant 0 : index
      %12 = vector.load %arg8[%c0, %c0_5, %c0_6] : memref<4x8x1xf32, #tpu.memory_space<vmem>>, vector<4x8x1xf32>
      %13 = tpu.reciprocal %12 {approx = true} : vector<4x8x1xf32> -> vector<4x8x1xf32>
      %c0_7 = arith.constant 0 : index
      %c0_8 = arith.constant 0 : index
      %c0_9 = arith.constant 0 : index
      %14 = vector.load %arg9[%c0_7, %c0_8, %c0_9] : memref<4x8x8xf32, #tpu.memory_space<vmem>>, vector<1x8x8xf32>
      %15 = vector.shape_cast %14 : vector<1x8x8xf32> to vector<8x8xf32>
      %16 = vector.extract_strided_slice %13 {offsets = [0, 0, 0], sizes = [1, 8, 1], strides = [1, 1, 1]} : vector<4x8x1xf32> to vector<1x8x1xf32>
      %17 = vector.shape_cast %16 : vector<1x8x1xf32> to vector<8x1xf32>
      %18 = vector.broadcast %17 : vector<8x1xf32> to vector<8x8xf32>
      %19 = arith.mulf %15, %18 : vector<8x8xf32>
      %c1 = arith.constant 1 : index
      %c0_10 = arith.constant 0 : index
      %c0_11 = arith.constant 0 : index
      %20 = vector.load %arg9[%c1, %c0_10, %c0_11] : memref<4x8x8xf32, #tpu.memory_space<vmem>>, vector<1x8x8xf32>
      %21 = vector.shape_cast %20 : vector<1x8x8xf32> to vector<8x8xf32>
      %22 = vector.extract_strided_slice %13 {offsets = [1, 0, 0], sizes = [1, 8, 1], strides = [1, 1, 1]} : vector<4x8x1xf32> to vector<1x8x1xf32>
      %23 = vector.shape_cast %22 : vector<1x8x1xf32> to vector<8x1xf32>
      %24 = vector.broadcast %23 : vector<8x1xf32> to vector<8x8xf32>
      %25 = arith.mulf %21, %24 : vector<8x8xf32>
      %c2 = arith.constant 2 : index
      %c0_12 = arith.constant 0 : index
      %c0_13 = arith.constant 0 : index
      %26 = vector.load %arg9[%c2, %c0_12, %c0_13] : memref<4x8x8xf32, #tpu.memory_space<vmem>>, vector<1x8x8xf32>
      %27 = vector.shape_cast %26 : vector<1x8x8xf32> to vector<8x8xf32>
      %28 = vector.extract_strided_slice %13 {offsets = [2, 0, 0], sizes = [1, 8, 1], strides = [1, 1, 1]} : vector<4x8x1xf32> to vector<1x8x1xf32>
      %29 = vector.shape_cast %28 : vector<1x8x1xf32> to vector<8x1xf32>
      %30 = vector.broadcast %29 : vector<8x1xf32> to vector<8x8xf32>
      %31 = arith.mulf %27, %30 : vector<8x8xf32>
      %c3 = arith.constant 3 : index
      %c0_14 = arith.constant 0 : index
      %c0_15 = arith.constant 0 : index
      %32 = vector.load %arg9[%c3, %c0_14, %c0_15] : memref<4x8x8xf32, #tpu.memory_space<vmem>>, vector<1x8x8xf32>
      %33 = vector.shape_cast %32 : vector<1x8x8xf32> to vector<8x8xf32>
      %34 = vector.extract_strided_slice %13 {offsets = [3, 0, 0], sizes = [1, 8, 1], strides = [1, 1, 1]} : vector<4x8x1xf32> to vector<1x8x1xf32>
      %35 = vector.shape_cast %34 : vector<1x8x1xf32> to vector<8x1xf32>
      %36 = vector.broadcast %35 : vector<8x1xf32> to vector<8x8xf32>
      %37 = arith.mulf %33, %36 : vector<8x8xf32>
      %38 = tpu.concatenate %19, %25, %31, %37 in 1 : vector<8x8xf32>, vector<8x8xf32>, vector<8x8xf32>, vector<8x8xf32> -> vector<8x32xf32>
      %c0_16 = arith.constant 0 : index
      %c0_17 = arith.constant 0 : index
      %c0_18 = arith.constant 0 : index
      %39 = vector.load %arg6[%c0_16, %c0_17, %c0_18] : memref<1x8x32xf32, #tpu.memory_space<vmem>>, vector<1x8x32xf32>
      %40 = vector.shape_cast %39 : vector<1x8x32xf32> to vector<8x32xf32>
      %41 = vector.shape_cast %38 : vector<8x32xf32> to vector<1x8x32xf32>
      tpu.vector_store %arg6[%c0_16, %c0_17, %c0_18], %41 {strides = array<i32>} : memref<1x8x32xf32, #tpu.memory_space<vmem>>, vector<1x8x32xf32>,
    } else {
    }
    return
  }
  func.func @transform_0(%arg0: i32, %arg1: i32, %arg2: i32) -> (i32, i32, i32) {
    %c0_i32 = arith.constant 0 : i32
    %c0_i32_0 = arith.constant 0 : i32
    return %arg0, %arg1, %c0_i32 : i32, i32, i32
  }
  func.func @transform_1(%arg0: i32, %arg1: i32, %arg2: i32) -> (i32, i32, i32) {
    %c0_i32 = arith.constant 0 : i32
    %c0_i32_0 = arith.constant 0 : i32
    return %arg0, %arg2, %c0_i32 : i32, i32, i32
  }
  func.func @transform_2(%arg0: i32, %arg1: i32, %arg2: i32) -> (i32, i32, i32) {
    %c0_i32 = arith.constant 0 : i32
    %c0_i32_0 = arith.constant 0 : i32
    return %arg0, %arg2, %c0_i32 : i32, i32, i32
  }
  func.func @transform_3(%arg0: i32, %arg1: i32, %arg2: i32) -> (i32, i32, i32) {
    %c0_i32 = arith.constant 0 : i32
    %c0_i32_0 = arith.constant 0 : i32
    return %arg0, %arg1, %c0_i32 : i32, i32, i32
  }
}

</mosaic_0001>

<bundles_post_ra>
// kernel: causal_self_attention.3
= control target key start
LH: loop header
LB: loop body
LE: loop exit
PB: predicated region body
PF: predicated region fallthrough
CT: control target
= control target key end

     0   :  { %8 = vsyncpa [#allocation4], 0  ;;  %s283_s0 = inlined_call_operand.hbm [shape: f32[16,32], index: 0, kind: input, shape index: {}]   ;;  %s284_s1 = inlined_call_operand.hbm [shape: f32[32,96], index: 1, kind: input, shape index: {}]   ;;  %s285_s2 = inlined_call_operand.vmem [shape: f32[1,96], index: 2, kind: input, shape index: {}]   ;;  %s286_s3 = inlined_call_operand.vmem [shape: f32[16,96], index: 3, kind: output, shape index: {}]  }
   0x1   :  { %9 = vsyncpa [#allocation6], 0  ;;  %s235_s12 = smov [#allocation3]  }
   0x2   :  { %s15_s13 = sshll.u32 %s235_s12, 4  ;;  %s16_s13 = int_to_ptr.vmem [resolvable:$true] %s15_s13 }
   0x3   :  { %s199_s14 = scalar_lea.vmem %s16_s13, 256  ;;  %p204_p1 = scmp.lt.s32.totalorder %s16_s13, %s16_s13 }
   0x4   :  { %p200_p0 = scmp.ne.s32.totalorder %s16_s13, %s199_s14  ;;  %p205_p2 = scmp.lt.s32.totalorder %s199_s14, %s199_s14 }
   0x6   :  { %p206_p3 = por %p205_p2, %p204_p1 }
   0x8   :  { %p207_p4 = pnand %p206_p3, %p200_p0 }
   0xa   :  { %210 = shalt.err (!%p207_p4)
}
   0xb   :  { %s236_s15 = smov 128   ;;  %s237_s16 = smov 8  }
   0xc   :  { %21 = dma.hbm_to_vmem [thread:$0]  %s283_s0, 256, %s16_s13, [#allocation4], %s236_s15, %s236_s15, %s237_s16  }
   0xd   :  { %s238_s19 = smov [#allocation5]  }
   0xe   :  { %s27_s20 = sshll.u32 %s238_s19, 4  ;;  %s28_s20 = int_to_ptr.vmem [resolvable:$true] %s27_s20 }
   0xf   :  { %s219_s21 = scalar_lea.vmem %s28_s20, 512  ;;  %p224_p6 = scmp.lt.s32.totalorder %s28_s20, %s28_s20 }
  0x10   :  { %p220_p5 = scmp.ne.s32.totalorder %s28_s20, %s219_s21  ;;  %p225_p7 = scmp.lt.s32.totalorder %s219_s21, %s219_s21 }
  0x12   :  { %p226_p8 = por %p225_p7, %p224_p6 }
  0x14   :  { %p227_p9 = pnand %p226_p8, %p220_p5 }
  0x16   :  { %230 = shalt.err (!%p227_p9)
}
  0x17   :  { %33 = dma.hbm_to_vmem [thread:$0]  %s284_s1, 512, %s28_s20, [#allocation6], %s236_s15, %s236_s15, %s237_s16  }
  0x18   :  { %231 = dma.done.wait [#allocation4], 256  }
  0x19   :  { %232 = vsyncadd [#allocation4], 4294967040 }
  0x1a   :  { %233 = dma.done.wait [#allocation6], 512  }
  0x1b   :  { %234 = vsyncadd [#allocation6], 4294966784  ;;  %vm46_vm0 = vcmask 785408   ;;  %v239_v0 = vmov 0.0   ;;  %vm57_vm1 = vcmask 261120   ;;  %v56_v1 = vld [vmem:[#allocation5 + $0x18] sm:$0xff] }
  0x1c   :  { %48 = vst.msk [vmem:[#allocation2 + $0x8] sm:$0xff] %vm46_vm0, %v239_v0  ;;  %47 = vst.msk [vmem:[#allocation2] sm:$0xff] %vm46_vm0, %v239_v0  ;;  %v55_v2 = vld [vmem:[#allocation5 + $0x10] sm:$0xff]  ;;  %175 = vmatprep.subr.mxu0 %v56_v1  ;;  %v54_v4 = vld [vmem:[#allocation5 + $0x8] sm:$0xff] }
  0x1d   :  { %v51_v3 = vld [vmem:[#allocation3] sm:$0xff]  ;;  %176 = vmatpush3.msra.mxu0 %v56_v1  ;;  %v53_v5 = vld [vmem:[#allocation5] sm:$0xff]  ;;  %v52_v6 = vld [vmem:[#allocation3 + $0x8] sm:$0xff] }
  0x1e   :  { %183 = vmatprep.mubr.msk.f32.mxu0 %vm57_vm1, %v51_v3  ;;  %177 = vmatprep.subr.mxu0 %v55_v2  ;;  %v168_v13 = vld [vmem:[%s285_s2] ss:$0 sm:$0xff] }
  0x1f   :  { %178 = vmatpush3.msra.mxu0 %v55_v2 }
  0x20   :  { %179 = vmatprep.subr.mxu0 %v54_v4 }
  0x21   :  { %180 = vmatpush3.msra.mxu0 %v54_v4 }
  0x22   :  { %181 = vmatprep.subr.mxu0 %v53_v5 }
  0x23   :  { %182 = vmatpush3.msra.mxu0 %v53_v5  ;;  %v50_v7 = vld [vmem:[#allocation2 + $0x8] sm:$0xff]  ;;  %v49_v9 = vld [vmem:[#allocation2] sm:$0xff] }
  0x24   :  { %184 = vmatmul.mubr.msk.f32.vlgmr.msra.gmra.mxu0 %vm57_vm1, %v52_v6 }
  0xe4   :  { %v185_v8 = vpop.f32.mrf.mxu0 }
  0xe5   :  { %v140_v10 = vadd.f32 %v185_v8, %v50_v7 }
  0xe6   :  { %v130_v11 = vpop.f32.mrf.mxu0 }
  0xe7   :  { %143 = vst.msk [vmem:[#allocation2 + $0x8] sm:$0xff] %vm46_vm0, %v140_v10  ;;  %v139_v12 = vadd.f32 %v130_v11, %v49_v9 }
  0xe9   :  { %142 = vst.msk [vmem:[#allocation2] sm:$0xff] %vm46_vm0, %v139_v12 }
  0xee   :  { %v148_v14 = vld [vmem:[#allocation2 + $0x8] sm:$0xff] }
  0xef   :  { %v157_v15 = vadd.f32 %v168_v13, %v148_v14 }
  0xf0   :  { %v147_v16 = vld [vmem:[#allocation2] sm:$0xff] }
  0xf1   :  { %159 = vst.msk [vmem:[%s286_s3 + $0x8] sm:$0xff] %vm46_vm0, %v157_v15  ;;  %v156_v17 = vadd.f32 %v168_v13, %v147_v16 }
  0xf3   :  { %158 = vst.msk [vmem:[%s286_s3] sm:$0xff] %vm46_vm0, %v156_v17 }
  0xf4   :  { %164 = vsyncpa [#allocation4], 1 }
  0xf5   :  { %165 = vsyncpa [#allocation6], 1 }

// kernel: causal_self_attention.5
= control target key start
LH: loop header
LB: loop body
LE: loop exit
PB: predicated region body
PF: predicated region fallthrough
CT: control target
= control target key end

     0   :  { %vm19_vm0 = vcmask 261120   ;;  %v194_v3 = vmov 0.0   ;;  %s250_s0 = inlined_call_operand.vmem [shape: f32[16,32], index: 0, kind: input, shape index: {}]   ;;  %s251_s1 = inlined_call_operand.vmem [shape: f32[32,32], index: 1, kind: input, shape index: {}]   ;;  %s252_s2 = inlined_call_operand.vmem [shape: f32[1,32], index: 2, kind: input, shape index: {}]   ;;  %s253_s3 = inlined_call_operand.hbm [shape: f32[16,32], index: 3, kind: output, shape index: {}]  }
   0x1   :  { %v29_v0 = vld [vmem:[%s251_s1 + $0x18] sm:$0xff]  ;;  %v28_v1 = vld [vmem:[%s251_s1 + $0x10] sm:$0xff]  ;;  %v24_v2 = vld [vmem:[%s250_s0] sm:$0xff]  ;;  %21 = vst.msk [vmem:[#allocation2 + $0x8] sm:$0xff] %vm19_vm0, %v194_v3 }
   0x2   :  { %157 = vmatprep.subr.mxu0 %v29_v0  ;;  %20 = vst.msk [vmem:[#allocation2] sm:$0xff] %vm19_vm0, %v194_v3  ;;  %v27_v4 = vld [vmem:[%s251_s1 + $0x8] sm:$0xff]  ;;  %165 = vmatprep.mubr.msk.f32.mxu0 %vm19_vm0, %v24_v2 }
   0x3   :  { %158 = vmatpush3.msra.mxu0 %v29_v0 }
   0x4   :  { %8 = vsyncpa [#allocation4], 0  ;;  %159 = vmatprep.subr.mxu0 %v28_v1  ;;  %v26_v5 = vld [vmem:[%s251_s1] sm:$0xff]  ;;  %v25_v6 = vld [vmem:[%s250_s0 + $0x8] sm:$0xff]  ;;  %s195_s25 = smov [#allocation3]  }
   0x5   :  { %160 = vmatpush3.msra.mxu0 %v28_v1  ;;  %v150_v13 = vld [vmem:[%s252_s2] ss:$0 sm:$0xff]  ;;  %s137_s0 = sshll.u32 %s195_s25, 4  ;;  %s138_s0 = int_to_ptr.vmem [resolvable:$true] %s137_s0 }
   0x6   :  { %161 = vmatprep.subr.mxu0 %v27_v4  ;;  %s172_s26 = scalar_lea.vmem %s138_s0, 256  ;;  %p177_p1 = scmp.lt.s32.totalorder %s138_s0, %s138_s0 }
   0x7   :  { %162 = vmatpush3.msra.mxu0 %v27_v4  ;;  %p173_p0 = scmp.ne.s32.totalorder %s138_s0, %s172_s26  ;;  %p178_p2 = scmp.lt.s32.totalorder %s172_s26, %s172_s26 }
   0x8   :  { %163 = vmatprep.subr.mxu0 %v26_v5  ;;  %v23_v7 = vld [vmem:[#allocation2 + $0x8] sm:$0xff] }
   0x9   :  { %164 = vmatpush3.msra.mxu0 %v26_v5  ;;  %v22_v9 = vld [vmem:[#allocation2] sm:$0xff]  ;;  %p179_p3 = por %p178_p2, %p177_p1 }
   0xa   :  { %166 = vmatmul.mubr.msk.f32.vlgmr.msra.gmra.mxu0 %vm19_vm0, %v25_v6 }
   0xb   :  { %p180_p4 = pnand %p179_p3, %p173_p0 }
  0xca   :  { %v167_v8 = vpop.f32.mrf.mxu0 }
  0xcb   :  { %v113_v10 = vadd.f32 %v167_v8, %v23_v7 }
  0xcc   :  { %v103_v11 = vpop.f32.mrf.mxu0 }
  0xcd   :  { %115 = vst.msk [vmem:[#allocation2 + $0x8] sm:$0xff] %vm19_vm0, %v113_v10  ;;  %v112_v12 = vadd.f32 %v103_v11, %v22_v9 }
  0xcf   :  { %114 = vst.msk [vmem:[#allocation2] sm:$0xff] %vm19_vm0, %v112_v12 }
  0xd4   :  { %v120_v14 = vld [vmem:[#allocation2 + $0x8] sm:$0xff] }
  0xd5   :  { %v129_v15 = vadd.f32 %v150_v13, %v120_v14 }
  0xd6   :  { %v119_v16 = vld [vmem:[#allocation2] sm:$0xff] }
  0xd7   :  { %v128_v17 = vadd.f32 %v150_v13, %v119_v16  ;;  %131 = vst.msk [vmem:[#allocation3 + $0x8] sm:$0xff] %vm19_vm0, %v129_v15 }
  0xd9   :  { %130 = vst.msk [vmem:[#allocation3] sm:$0xff] %vm19_vm0, %v128_v17 }
  0xda   :  { %183 = shalt.err (!%p180_p4)
}
  0xdb   :  { %s196_s27 = smov 128   ;;  %s197_s2 = smov 8  }
  0xdc   :  { %143 = dma.vmem_to_hbm [thread:$0]  %s138_s0, 256, %s253_s3, [#allocation4], %s196_s27, %s196_s27, %s197_s2  }
  0xdd   :  { %192 = dma.done.wait [#allocation4], 256  }
  0xde   :  { %193 = vsyncadd [#allocation4], 4294967040 }
  0xdf   :  { %147 = vsyncpa [#allocation4], 1 }

// kernel: causal_self_attention.4
= control target key start
LH: loop header
LB: loop body
LE: loop exit
PB: predicated region body
PF: predicated region fallthrough
CT: control target
= control target key end

     0   :  { %s1420_s12 = smov 0   ;;  %s1422_s13 = smov 0   ;;  %s1584_s0 = inlined_call_operand.vmem [shape: f32[2,8,32], index: 0, kind: input, shape index: {}]   ;;  %s1585_s1 = inlined_call_operand.vmem [shape: f32[2,8,32], index: 1, kind: input, shape index: {}]   ;;  %s1586_s2 = inlined_call_operand.vmem [shape: f32[2,8,32], index: 2, kind: input, shape index: {}]   ;;  %s1587_s3 = inlined_call_operand.vmem [shape: f32[2,8,32], index: 3, kind: output, shape index: {}]  }
   0x1   :  { %s1424_s14 = smov 0  }
   0x2 LB: > { %s32_s15 = sadd.s32 1, %s1384_s13  ;;  %p1231_p0 = scmp.ge.s32.totalorder %s1388_s14, 1  ;;  %s1388_s14 = sphi %s1424_s14, %s13_s14   ;;  %s1384_s13 = sphi %s1422_s13, %s1589_s13   ;;  %s1380_s12 = sphi %s1420_s12, %s1588_s12  }
   0x3   : > { %p34_p1 = scmp.ge.s32.totalorder %s32_s15, 2  ;;  %p190_p2 = scmp.lt.s32.totalorder %s1388_s14, 3 }
   0x5   : > { %s1591_s15 = smov (%p34_p1, %s32_s15), 0  ;;  %p191_p3 = pnand %p1231_p0, %p190_p2 }
   0x6   : > { %p232_p4 = scmp.lt.s32.totalorder (!%p191_p3), %s1380_s12, 1  ;;  %s1394_s23 = smov (!%p191_p3), 120  }
   0x7   : > { %194 = sbr.rel (%p191_p3) target bundleno = 1391 (0x56f), region = 32  ;;  %s1395_s24 = smov (!%p191_p3), 112  }
   0x8   : > { %s1396_s25 = smov (!%p191_p3), 104   ;;  %s1397_s29 = smov (!%p191_p3), 8  }
   0x9   : > { %s1398_s30 = smov (!%p191_p3), 16   ;;  %s1399_s4 = smov (!%p191_p3), 24  }
   0xc   : > { %vm273_vm0 = vcmask 64512   ;;  %v1390_v0 = vmov 0.0   ;;  %vm1391_vm1 = vmmov 0   ;;  %s1593_s12 = smov (!%p232_p4, %s1380_s12), 1  ;;  %vm264_vm2 = vcmask 7168  }
   0xd   : > { %1266 = vmatprep.subr.mxu0 %v1390_v0  ;;  %274 = vst.msk [vmem:[#allocation4] sm:$0xff] %vm273_vm0, %v1390_v0  ;;  %275 = vst.msk [vmem:[#allocation4 + $0x8] sm:$0xff] %vm273_vm0, %v1390_v0  ;;  %1268 = vmatprep.mubr.msk.f32.mxu0 %vm1391_vm1, %v1390_v0  ;;  %s1452_s16 = sshll.u32 %s1593_s12, 3  ;;  %v1392_v4 = vmov -inf   ;;  %v290_v5 = vlaneseq  ;;  %v1393_v12 = vmov 0   ;;  %vm1114_vm4 = vcmask 130048  }
   0xe   : > { %276 = vst.msk [vmem:[#allocation4 + $0x10] sm:$0xff] %vm273_vm0, %v1390_v0  ;;  %277 = vst.msk [vmem:[#allocation4 + $0x18] sm:$0xff] %vm273_vm0, %v1390_v0  ;;  %1271 = vmatprep.subr.mxu1 %v1390_v0  ;;  %1273 = vmatprep.mubr.msk.f32.mxu1 %vm1391_vm1, %v1390_v0  ;;  %s245_s19 = scalar_lea.vmem %s1585_s1, %s1452_s16  ;;  %s238_s22 = scalar_lea.vmem %s1584_s0, %s1452_s16  ;;  %vm1116_vm5 = vcmask 195584   ;;  %vm1118_vm6 = vcmask 261120  }
   0xf   : > { %v287_v1 = vld [vmem:[%s245_s19] sm:$0xff]  ;;  %265 = vst.msk [vmem:[#allocation2] sm:$0xff] %vm264_vm2, %v1392_v4  ;;  %266 = vst.msk [vmem:[#allocation2 + $0x8] sm:$0xff] %vm264_vm2, %v1392_v4  ;;  %v1479_v6 = vshrl.u32 %v290_v5, 7  ;;  %v1481_v7 = vand.u32 127, %v290_v5  ;;  %1340 = vset.pattern.permute.xlu0 %v1393_v12  ;;  %1341 = vset.pattern.permute.xlu1 %v1393_v12  ;;  %s252_s28 = scalar_lea.vmem %s1586_s2, %s1452_s16  ;;  %s259_s7 = scalar_lea.vmem %s1587_s3, %s1452_s16 }
  0x10   : > { %v285_v2 = vld [vmem:[%s238_s22] sm:$0xff]  ;;  %1267 = vmatpush3.xpose.msk.msra.mxu0 %vm273_vm0, %v287_v1  ;;  %267 = vst.msk [vmem:[#allocation2 + $0x10] sm:$0xff] %vm264_vm2, %v1392_v4  ;;  %268 = vst.msk [vmem:[#allocation2 + $0x18] sm:$0xff] %vm264_vm2, %v1392_v4  ;;  %486 = vrot.lane.b32.xlu1 %v287_v1, %s1394_s23 }
  0x11   : > { %v286_v3 = vmul.f32 0.35355338, %v285_v2  ;;  %1281 = vmatprep.subr.mxu0 %v1390_v0  ;;  %269 = vst.msk [vmem:[#allocation3] sm:$0xff] %vm264_vm2, %v1390_v0  ;;  %270 = vst.msk [vmem:[#allocation3 + $0x8] sm:$0xff] %vm264_vm2, %v1390_v0  ;;  %vm298_vm3 = vcmp.le.s32.totalorder %v1481_v7, %v1479_v6  ;;  %v288_v17 = vld [vmem:[%s252_s28] sm:$0xff] }
  0x12   : > { %271 = vst.msk [vmem:[#allocation3 + $0x10] sm:$0xff] %vm264_vm2, %v1390_v0  ;;  %272 = vst.msk [vmem:[#allocation3 + $0x18] sm:$0xff] %vm264_vm2, %v1390_v0  ;;  %1272 = vmatpush3.msra.mxu1 %v288_v17 }
  0x13   : > { %1269 = vmatmul.mubr.msk.f32.vlgmr.msra.gmra.mxu0 %vm273_vm0, %v286_v3  ;;  %1276 = vmatprep.subr.mxu1 %v1390_v0 }
  0x14   : > { %1283 = vmatprep.mubr.msk.f32.mxu0 %vm1391_vm1, %v1390_v0  ;;  %484 = vrot.lane.b32.xlu1 %v286_v3, %s1394_s23 }
  0x16   : > { %v1495_v13 = vld [vmem:[#allocation2] sm:$0xff]  ;;  %v564_v42 = vld [vmem:[#allocation2 + $0x8] sm:$0xff] }
  0x17   : > { %v756_v45 = vld [vmem:[#allocation2 + $0x10] sm:$0xff]  ;;  %v947_v49 = vld [vmem:[#allocation2 + $0x18] sm:$0xff] }
  0x18   : > { %678 = vrot.lane.b32.xlu1 %v287_v1, %s1395_s24 }
  0x1c   : > { %676 = vrot.lane.b32.xlu1 %v286_v3, %s1395_s24 }
  0x20   : > { %869 = vrot.lane.b32.xlu1 %v287_v1, %s1396_s25 }
  0x24   : > { %867 = vrot.lane.b32.xlu1 %v286_v3, %s1396_s25 }
  0x82   : > { %v487_v18 = vpop.permute.xlu1 %486 }
  0x86   : > { %v485_v22 = vpop.permute.xlu1 %484 }
  0x8a   : > { %v679_v23 = vpop.permute.xlu1 %678 }
  0x8e   : > { %v677_v24 = vpop.permute.xlu1 %676 }
  0x92   : > { %v870_v26 = vpop.permute.xlu1 %869 }
  0x96   : > { %v868_v27 = vpop.permute.xlu1 %867 }
  0xd3   : > { %v372_v8 = vpop.f32.mrf.mxu0 }
  0xd4   : > { %v376_v9 = vsel %vm298_vm3, %v372_v8, -inf }
  0xd5   : > { %v1270_v10 = vpop.f32.mrf.mxu0  ;;  %v378_v11 = vsel %vm273_vm0, %v376_v9, -inf }
  0xd6   : > { %379 = vmax.xlane.f32.xlu0 %v378_v11 }
 0x15f   : > { %v380_v14 = vpop.xlane.xlu0 %379 }
 0x160   : > { %v1498_v15 = vmax.f32 %v1495_v13, %v380_v14 }
 0x162   : > { %v382_v16 = vsub.f32 %v1495_v13, %v1498_v15  ;;  %483 = vst.msk [vmem:[#allocation2] sm:$0xff] %vm264_vm2, %v1498_v15  ;;  %387 = vperm.xlu0 %1340, %v1498_v15   ;;  %v581_v15 = vld [vmem:[#allocation3 + $0x8] sm:$0xff] }
 0x164   : > { %v383_v12 = vmul.f32 1.442695, %v382_v16 }
 0x1dd   : > { %v388_v19 = vpop.permute.xlu0 %387 }
 0x1de   : > { %v390_v20 = vsub.f32 %v376_v9, %v388_v19 }
 0x1e0   : > { %v391_v21 = vmul.f32 1.442695, %v390_v20  ;;  %v393_v20 = vld [vmem:[#allocation3] sm:$0xff] }
 0x1e2   : > { %1342 = vpow2.f32 %v391_v21 }
 0x1ef   : > { %v1343_v25 = vpop.eup %1342 }
 0x1f0   : > { %1274 = vmatmul.mubr.msk.f32.vlgmr.msra.gmra.mxu1 %vm273_vm0, %v1343_v25  ;;  %v395_v54 = vsel %vm273_vm0, %v1343_v25, 0.0 }
 0x1f1   : > { %1277 = vmatpush3.xpose.msk.msra.mxu1 %vm273_vm0, %v487_v18  ;;  %1278 = vmatprep.mubr.msk.f32.mxu1 %vm1391_vm1, %v1390_v0 }
 0x1f2   : > { %1286 = vmatprep.subr.mxu1 %v1390_v0 }
 0x1f4   : > { %1279 = vmatmul.mubr.msk.f32.vlgmr.msra.gmra.mxu1 %vm273_vm0, %v485_v22 }
 0x1f5   : > { %1287 = vmatpush3.xpose.msk.msra.mxu1 %vm273_vm0, %v679_v23  ;;  %1288 = vmatprep.mubr.msk.f32.mxu1 %vm1391_vm1, %v1390_v0 }
 0x1f6   : > { %1296 = vmatprep.subr.mxu1 %v1390_v0 }
 0x1f8   : > { %1289 = vmatmul.mubr.msk.f32.vlgmr.msra.gmra.mxu1 %vm273_vm0, %v677_v24 }
 0x1f9   : > { %1297 = vmatpush3.xpose.msk.msra.mxu1 %vm273_vm0, %v870_v26  ;;  %1298 = vmatprep.mubr.msk.f32.mxu1 %vm1391_vm1, %v1390_v0  ;;  %v773_v26 = vld [vmem:[#allocation3 + $0x10] sm:$0xff] }
 0x1fc   : > { %1299 = vmatmul.mubr.msk.f32.vlgmr.msra.gmra.mxu1 %vm273_vm0, %v868_v27 }
 0x2b0   : > { %v1525_v28 = vpop.f32.mrf.mxu1 }
 0x2b2   : > { %v1275_v29 = vpop.f32.mrf.mxu1 }
 0x2b4   : > { %v558_v30 = vpop.f32.mrf.mxu1 }
 0x2b5   : > { %v562_v31 = vsel %vm298_vm3, %v558_v30, -inf }
 0x2b6   : > { %v1280_v32 = vpop.f32.mrf.mxu1  ;;  %v565_v33 = vsel %vm273_vm0, %v562_v31, -inf }
 0x2b7   : > { %566 = vmax.xlane.f32.xlu1 %v565_v33 }
 0x2b8   : > { %v750_v34 = vpop.f32.mrf.mxu1 }
 0x2b9   : > { %v754_v35 = vsel %vm298_vm3, %v750_v34, -inf }
 0x2ba   : > { %v1290_v36 = vpop.f32.mrf.mxu1  ;;  %v757_v37 = vsel %vm273_vm0, %v754_v35, -inf }
 0x2bb   : > { %758 = vmax.xlane.f32.xlu0 %v757_v37  ;;  %v401_v37 = vld [vmem:[#allocation4] sm:$0xff] }
 0x2bc   : > { %v941_v38 = vpop.f32.mrf.mxu1 }
 0x2bd   : > { %v945_v39 = vsel %vm298_vm3, %v941_v38, -inf }
 0x2be   : > { %v1300_v40 = vpop.f32.mrf.mxu1  ;;  %v948_v41 = vsel %vm273_vm0, %v945_v39, -inf }
 0x2bf   : > { %949 = vmax.xlane.f32.xlu1 %v948_v41 }
 0x340   : > { %v567_v43 = vpop.xlane.xlu1 %566 }
 0x341   : > { %v568_v44 = vmax.f32 %v564_v42, %v567_v43 }
 0x343   : > { %v569_v46 = vsub.f32 %v564_v42, %v568_v44  ;;  %675 = vst.msk [vmem:[#allocation2 + $0x8] sm:$0xff] %vm264_vm2, %v568_v44  ;;  %574 = vperm.xlu1 %1341, %v568_v44  }
 0x344   : > { %v759_v47 = vpop.xlane.xlu0 %758 }
 0x345   : > { %v760_v48 = vmax.f32 %v756_v45, %v759_v47  ;;  %v570_v7 = vmul.f32 1.442695, %v569_v46  ;;  %v589_v46 = vld [vmem:[#allocation4 + $0x8] sm:$0xff] }
 0x347   : > { %v761_v50 = vsub.f32 %v756_v45, %v760_v48  ;;  %866 = vst.msk [vmem:[#allocation2 + $0x10] sm:$0xff] %vm264_vm2, %v760_v48  ;;  %766 = vperm.xlu0 %1340, %v760_v48  }
 0x348   : > { %v950_v51 = vpop.xlane.xlu1 %949 }
 0x349   : > { %v951_v52 = vmax.f32 %v947_v49, %v950_v51  ;;  %v762_v14 = vmul.f32 1.442695, %v761_v50 }
 0x34b   : > { %v952_v53 = vsub.f32 %v947_v49, %v951_v52  ;;  %1057 = vst.msk [vmem:[#allocation2 + $0x18] sm:$0xff] %vm264_vm2, %v951_v52  ;;  %957 = vperm.xlu1 %1341, %v951_v52   ;;  %v781_v49 = vld [vmem:[#allocation4 + $0x10] sm:$0xff] }
 0x34d   : > { %v953_v10 = vmul.f32 1.442695, %v952_v53 }
 0x34f   : > { %597 = vrot.lane.b32.xlu1 %v288_v17, %s1394_s23 }
 0x353   : > { %788 = vrot.lane.b32.xlu1 %v288_v17, %s1395_s24 }
 0x357   : > { %979 = vrot.lane.b32.xlu1 %v288_v17, %s1396_s25 }
 0x37b   : > { %396 = vadd.xlane.f32.xlu1 %v395_v54 }
 0x3be   : > { %v575_v55 = vpop.permute.xlu1 %574 }
 0x3bf   : > { %v577_v56 = vsub.f32 %v562_v31, %v575_v55  ;;  %v964_v31 = vld [vmem:[#allocation3 + $0x18] sm:$0xff] }
 0x3c1   : > { %v578_v57 = vmul.f32 1.442695, %v577_v56 }
 0x3c2   : > { %v767_v58 = vpop.permute.xlu0 %766 }
 0x3c3   : > { %1344 = vpow2.f32 %v578_v57  ;;  %v769_v59 = vsub.f32 %v754_v35, %v767_v58 }
 0x3c5   : > { %v770_v60 = vmul.f32 1.442695, %v769_v59 }
 0x3c6   : > { %v958_v61 = vpop.permute.xlu1 %957 }
 0x3c7   : > { %1346 = vpow2.f32 %v770_v60  ;;  %v960_v62 = vsub.f32 %v945_v39, %v958_v61 }
 0x3c9   : > { %v961_v63 = vmul.f32 1.442695, %v960_v62 }
 0x3ca   : > { %v598_v1 = vpop.permute.xlu1 %597 }
 0x3cb   : > { %1348 = vpow2.f32 %v961_v63  ;;  %1282 = vmatpush3.msra.mxu0 %v598_v1 }
 0x3cc   : > { %1291 = vmatprep.subr.mxu0 %v1390_v0  ;;  %1350 = vpow2.f32 %v570_v7 }
 0x3cd   : > { %1352 = vpow2.f32 %v953_v10 }
 0x3ce   : > { %v789_v2 = vpop.permute.xlu1 %788  ;;  %1354 = vpow2.f32 %v383_v12 }
 0x3cf   : > { %1356 = vpow2.f32 %v762_v14 }
 0x3d0   : > { %v1345_v3 = vpop.eup %1344 }
 0x3d1   : > { %1284 = vmatmul.mubr.msk.f32.vlgmr.msra.gmra.mxu0 %vm273_vm0, %v1345_v3  ;;  %v583_v4 = vsel %vm273_vm0, %v1345_v3, 0.0 }
 0x3d2   : > { %584 = vadd.xlane.f32.xlu0 %v583_v4  ;;  %1292 = vmatpush3.msra.mxu0 %v789_v2  ;;  %v980_v5 = vpop.permute.xlu1 %979 }
 0x3d3   : > { %1293 = vmatprep.mubr.msk.f32.mxu0 %vm1391_vm1, %v1390_v0  ;;  %1301 = vmatprep.subr.mxu0 %v1390_v0 }
 0x3d4   : > { %v1347_v6 = vpop.eup %1346 }
 0x3d5   : > { %1294 = vmatmul.mubr.msk.f32.vlgmr.msra.gmra.mxu0 %vm273_vm0, %v1347_v6  ;;  %v775_v8 = vsel %vm273_vm0, %v1347_v6, 0.0 }
 0x3d6   : > { %776 = vadd.xlane.f32.xlu1 %v775_v8  ;;  %1302 = vmatpush3.msra.mxu0 %v980_v5 }
 0x3d7   : > { %1303 = vmatprep.mubr.msk.f32.mxu0 %vm1391_vm1, %v1390_v0 }
 0x3d8   : > { %v1349_v9 = vpop.eup %1348 }
 0x3d9   : > { %1304 = vmatmul.mubr.msk.f32.vlgmr.msra.gmra.mxu0 %vm273_vm0, %v1349_v9  ;;  %v966_v11 = vsel %vm273_vm0, %v1349_v9, 0.0  ;;  %v1351_v17 = vpop.eup %1350 }
 0x3da   : > { %967 = vadd.xlane.f32.xlu0 %v966_v11  ;;  %v1353_v18 = vpop.eup %1352  ;;  %v582_v16 = vmul.f32 %v1351_v17, %v581_v15 }
 0x3db   : > { %v1355_v0 = vpop.eup %1354  ;;  %v965_v33 = vmul.f32 %v1353_v18, %v964_v31 }
 0x3dc   : > { %v1357_v19 = vpop.eup %1356  ;;  %v394_v21 = vmul.f32 %v1355_v0, %v393_v20 }
 0x3dd   : > { %v774_v29 = vmul.f32 %v1357_v19, %v773_v26 }
 0x3e7   : > { %592 = vperm.xlu1 %1341, %v1351_v17  }
 0x3eb   : > { %975 = vperm.xlu1 %1341, %v1353_v18  }
 0x3f0   : > { %404 = vperm.xlu0 %1340, %v1355_v0  }
 0x3f4   : > { %784 = vperm.xlu0 %1340, %v1357_v19  }
 0x404   : > { %v397_v22 = vpop.xlane.xlu1 %396 }
 0x405   : > { %v398_v23 = vadd.f32 %v397_v22, %v394_v21 }
 0x407   : > { %400 = vst.msk [vmem:[#allocation3] sm:$0xff] %vm264_vm2, %v398_v23 }
 0x40e   : > { %v1061_v24 = vld [vmem:[#allocation3] sm:$0xff] }
 0x40f   : > { %1358 = vrcp.f32 %v1061_v24 }
 0x41c   : > { %v1359_v13 = vpop.eup %1358 }
 0x41d   : > { %1072 = vperm.xlu1 %1341, %v1359_v13  }
 0x45b   : > { %v585_v25 = vpop.xlane.xlu0 %584 }
 0x45c   : > { %v586_v27 = vadd.f32 %v585_v25, %v582_v16 }
 0x45e   : > { %587 = vst.msk [vmem:[#allocation3 + $0x8] sm:$0xff] %vm264_vm2, %v586_v27 }
 0x45f   : > { %v777_v30 = vpop.xlane.xlu1 %776 }
 0x460   : > { %v778_v32 = vadd.f32 %v777_v30, %v774_v29 }
 0x462   : > { %779 = vst.msk [vmem:[#allocation3 + $0x10] sm:$0xff] %vm264_vm2, %v778_v32 }
 0x463   : > { %v968_v34 = vpop.xlane.xlu0 %967  ;;  %v593_v47 = vpop.permute.xlu1 %592 }
 0x464   : > { %v969_v35 = vadd.f32 %v968_v34, %v965_v33  ;;  %v595_v48 = vmul.f32 %v593_v47, %v589_v46 }
 0x465   : > { %v1062_v36 = vld [vmem:[#allocation3 + $0x8] sm:$0xff] }
 0x466   : > { %970 = vst.msk [vmem:[#allocation3 + $0x18] sm:$0xff] %vm264_vm2, %v969_v35  ;;  %1360 = vrcp.f32 %v1062_v36 }
 0x467   : > { %v976_v55 = vpop.permute.xlu1 %975 }
 0x469   : > { %v1063_v38 = vld [vmem:[#allocation3 + $0x10] sm:$0xff] }
 0x46a   : > { %1362 = vrcp.f32 %v1063_v38 }
 0x46b   : > { %v405_v39 = vpop.permute.xlu0 %404 }
 0x46c   : > { %v407_v40 = vmul.f32 %v405_v39, %v401_v37 }
 0x46d   : > { %v1064_v41 = vld [vmem:[#allocation3 + $0x18] sm:$0xff] }
 0x46e   : > { %v481_v42 = vadd.f32 %v1525_v28, %v407_v40  ;;  %1364 = vrcp.f32 %v1064_v41  ;;  %v972_v28 = vld [vmem:[#allocation4 + $0x18] sm:$0xff] }
 0x46f   : > { %v785_v50 = vpop.permute.xlu0 %784  ;;  %v978_v59 = vmul.f32 %v976_v55, %v972_v28 }
 0x470   : > { %482 = vst.msk [vmem:[#allocation4] sm:$0xff] %vm273_vm0, %v481_v42  ;;  %v787_v54 = vmul.f32 %v785_v50, %v781_v49 }
 0x473   : > { %v1361_v43 = vpop.eup %1360 }
 0x474   : > { %1080 = vperm.xlu0 %1340, %v1361_v43  }
 0x477   : > { %v1363_v44 = vpop.eup %1362  ;;  %v1069_v10 = vld [vmem:[#allocation4] sm:$0xff] }
 0x478   : > { %1088 = vperm.xlu1 %1341, %v1363_v44  }
 0x47b   : > { %v1365_v45 = vpop.eup %1364 }
 0x47c   : > { %1096 = vperm.xlu0 %1340, %v1365_v45  }
 0x491   : > { %v669_v51 = vpop.f32.mrf.mxu0 }
 0x492   : > { %v673_v52 = vadd.f32 %v669_v51, %v595_v48 }
 0x493   : > { %v1285_v53 = vpop.f32.mrf.mxu0 }
 0x494   : > { %674 = vst.msk [vmem:[#allocation4 + $0x8] sm:$0xff] %vm273_vm0, %v673_v52 }
 0x495   : > { %v860_v56 = vpop.f32.mrf.mxu0 }
 0x496   : > { %v864_v57 = vadd.f32 %v860_v56, %v787_v54 }
 0x497   : > { %v1295_v58 = vpop.f32.mrf.mxu0 }
 0x498   : > { %865 = vst.msk [vmem:[#allocation4 + $0x10] sm:$0xff] %vm273_vm0, %v864_v57  ;;  %v1073_v63 = vpop.permute.xlu1 %1072 }
 0x499   : > { %v1051_v60 = vpop.f32.mrf.mxu0  ;;  %v1075_v12 = vmul.f32 %v1073_v63, %v1069_v10 }
 0x49a   : > { %v1055_v61 = vadd.f32 %v1051_v60, %v978_v59 }
 0x49b   : > { %v1305_v62 = vpop.f32.mrf.mxu0  ;;  %v1077_v2 = vld [vmem:[#allocation4 + $0x8] sm:$0xff] }
 0x49c   : > { %1056 = vst.msk [vmem:[#allocation4 + $0x18] sm:$0xff] %vm273_vm0, %v1055_v61 }
 0x49f   : > { %v1085_v5 = vld [vmem:[#allocation4 + $0x10] sm:$0xff] }
 0x4a3   : > { %v1093_v8 = vld [vmem:[#allocation4 + $0x18] sm:$0xff] }
 0x4ef   : > { %v1081_v1 = vpop.permute.xlu0 %1080 }
 0x4f0   : > { %v1083_v3 = vmul.f32 %v1081_v1, %v1077_v2 }
 0x4f2   : > { %1101 = vrot.lane.b32.xlu1 %v1083_v3, %s1397_s29 }
 0x4f3   : > { %v1089_v4 = vpop.permute.xlu1 %1088 }
 0x4f4   : > { %v1091_v6 = vmul.f32 %v1089_v4, %v1085_v5 }
 0x4f6   : > { %1105 = vrot.lane.b32.xlu0 %v1091_v6, %s1398_s30 }
 0x4f7   : > { %v1097_v7 = vpop.permute.xlu0 %1096 }
 0x4f8   : > { %v1099_v9 = vmul.f32 %v1097_v7, %v1093_v8 }
 0x4fa   : > { %1109 = vrot.lane.b32.xlu1 %v1099_v9, %s1399_s4 }
 0x564   : > { %v1102_v11 = vpop.permute.xlu1 %1101 }
 0x565   : > { %v1113_v17 = vsel %vm273_vm0, %v1075_v12, %v1102_v11 }
 0x568   : > { %v1106_v14 = vpop.permute.xlu0 %1105 }
 0x569   : > { %v1115_v18 = vsel %vm1114_vm4, %v1113_v17, %v1106_v14 }
 0x56c   : > { %v1110_v0 = vpop.permute.xlu1 %1109 }
 0x56d   : > { %v1117_v19 = vsel %vm1116_vm5, %v1115_v18, %v1110_v0 }
 0x56e   : > { %1119 = vst.msk [vmem:[%s259_s7] sm:$0xff] %vm1118_vm6, %v1117_v19 }
 0x56f PF: > { %s13_s14 = sadd.s32 1, %s1388_s14   ;;  %s1588_s12 = smov %s1384_s13 }
 0x570   : > { %p10_p5 = scmp.ge.s32.totalorder %s13_s14, 4   ;;  %s1589_s13 = smov %s1591_s15 }
 0x572   :  { %12 = sbr.rel (!%p10_p5) target bundleno = 2 (0x2), region = 92 }

</bundles_post_ra>
